<compile_context>
chip_gen: v7x
topology: tpu7x:2x2x1
jax: 0.10.0
libtpu: 0.0.40
codegen_flags: <defaults>
</compile_context>

<pallas_src>
import math
import numpy as np
import jax
import jax.numpy as jnp
from jax import lax
from jax.experimental import pallas as pl
from jax.experimental.pallas import tpu as pltpu

D_MODEL = 32
N_HEADS = 4
HEAD_DIM = D_MODEL // N_HEADS        # 8
NOPE_DIM = HEAD_DIM // 2             # 4
ROPE_DIM = HEAD_DIM // 2             # 4
ROPE_HALF = ROPE_DIM // 2            # 2
GN = N_HEADS * NOPE_DIM              # 16 lanes of all-head nope
GR = N_HEADS * ROPE_HALF             # 8 lanes of all-head rope_even / rope_odd
MAX_LEN = 64
ROPE_THETA = 10000.0
INIT_SCALE = 0.02


def _dot_nt(a, b):
    """a @ b.T with f32 accumulation (single MXU push)."""
    return lax.dot_general(a, b, (((1,), (1,)), ((), ())),
                           preferred_element_type=jnp.float32)


# ------------------------------ fused kernel ---------------------------------
def _fused_mha_kernel(x_ref, wqkv_ref, wo_ref, cos_ref, sin_ref, o_ref):
    # x_ref:    (Bt, S, D)  f32 batch block
    # wqkv_ref: (D, 3D)     bf16; Q/K parts grouped across heads as
    #                       [all nope | all rope_even | all rope_odd];
    #                       1/sqrt(head_dim) pre-folded into the Q columns
    # wo_ref:   (D, D)      bf16, wo.T
    # cos_ref:  (S, GR)     f32, cos tiled per head
    # sin_ref:  (S, GR)     f32
    # o_ref:    (Bt, S, D)  f32
    Bt, S, D = x_ref.shape

    x2d = x_ref[...].reshape(Bt * S, D).astype(jnp.bfloat16)
    wqkv = wqkv_ref[...]                      # bf16 (D, 3D)
    wo_t = wo_ref[...]                        # bf16 (D, D)
    cos = cos_ref[...]                        # f32 (S, GR)
    sin = sin_ref[...]

    # --- one QKV projection matmul for the whole batch block ---
    qkv = jnp.dot(x2d, wqkv, preferred_element_type=jnp.float32)   # (Bt*S, 3D)

    # --- causal mask (past_length = 0), computed once per grid step ---
    row = lax.broadcasted_iota(jnp.int32, (S, S), 0)
    col = lax.broadcasted_iota(jnp.int32, (S, S), 1)
    masked = col > row

    ctx_rows = []
    for b in range(Bt):
        qkv_b = qkv[b * S:(b + 1) * S]                             # (S, 3D) f32

        # grouped (all-head) slices: wide contiguous lane windows
        q_n = qkv_b[:, 0:GN]
        q_e = qkv_b[:, GN:GN + GR]
        q_o = qkv_b[:, GN + GR:D]
        k_n = qkv_b[:, D:D + GN]
        k_e = qkv_b[:, D + GN:D + GN + GR]
        k_o = qkv_b[:, D + GN + GR:2 * D]
        v_all = qkv_b[:, 2 * D:3 * D].astype(jnp.bfloat16)

        # decoupled RoPE for all heads at once (f32 math, bf16 for the MXU)
        qa = (q_e * cos - q_o * sin).astype(jnp.bfloat16)
        qb = (q_o * cos + q_e * sin).astype(jnp.bfloat16)
        ka = (k_e * cos - k_o * sin).astype(jnp.bfloat16)
        kb = (k_o * cos + k_e * sin).astype(jnp.bfloat16)
        q_n = q_n.astype(jnp.bfloat16)
        k_n = k_n.astype(jnp.bfloat16)

        head_outs = []
        for h in range(N_HEADS):
            ns = slice(h * NOPE_DIM, (h + 1) * NOPE_DIM)
            rs = slice(h * ROPE_HALF, (h + 1) * ROPE_HALF)
            # 1/sqrt(head_dim) already folded into the Q weight
            scores = (_dot_nt(q_n[:, ns], k_n[:, ns])
                      + _dot_nt(qa[:, rs], ka[:, rs])
                      + _dot_nt(qb[:, rs], kb[:, rs]))             # (S, S) f32
            scores = jnp.where(masked, -jnp.inf, scores)

            m_ = jnp.max(scores, axis=-1, keepdims=True)
            p = jnp.exp(scores - m_)                               # f32 softmax
            attn = p * pl.reciprocal(jnp.sum(p, axis=-1, keepdims=True),
                                     approx=True)
            # TODO(synk): dropout omitted (eval-mode identity); the
            # `last_attn_pattern` (rope-only scores) side buffer is not kept.
            v_h = v_all[:, h * HEAD_DIM:(h + 1) * HEAD_DIM]
            head_outs.append(jnp.dot(attn.astype(jnp.bfloat16), v_h,
                                     preferred_element_type=jnp.float32))
        ctx_rows.append(jnp.concatenate(head_outs, axis=-1))       # (S, D) f32

    ctx = ctx_rows[0] if Bt == 1 else jnp.concatenate(ctx_rows, axis=0)
    # --- one output-projection matmul for the whole batch block ---
    y = jnp.dot(ctx.astype(jnp.bfloat16), wo_t,
                preferred_element_type=jnp.float32)                # (Bt*S, D)
    o_ref[...] = y.reshape(Bt, S, D).astype(o_ref.dtype)


# --------------------------- one-time parameter prep --------------------------
def prepare_params(qkv_w, wo_w, cos_cached, sin_cached, seq_len):
    """Host-side, one-time weight/RoPE-table preparation (hoisted off the call path)."""
    D, H, hd = D_MODEL, N_HEADS, HEAD_DIM
    # Group components ACROSS heads: [all nope | all rope_even | all rope_odd].
    perm = np.concatenate(
        [np.concatenate([h * hd + np.arange(NOPE_DIM) for h in range(H)]),
         np.concatenate([h * hd + NOPE_DIM + 2 * np.arange(ROPE_HALF)
                         for h in range(H)]),
         np.concatenate([h * hd + NOPE_DIM + 1 + 2 * np.arange(ROPE_HALF)
                         for h in range(H)])])
    inv_scale = 1.0 / math.sqrt(hd)
    wq = qkv_w[:D][perm] * inv_scale          # fold softmax scale into Q weight
    wk = qkv_w[D:2 * D][perm]
    wv = qkv_w[2 * D:]
    wqkv_t = jnp.concatenate([wq, wk, wv], axis=0).T.astype(jnp.bfloat16)  # (D, 3D)
    wo_t = wo_w.T.astype(jnp.bfloat16)                                     # (D, D)
    cos_t = jnp.tile(cos_cached[:seq_len], (1, H))     # (S, H*ROPE_HALF)
    sin_t = jnp.tile(sin_cached[:seq_len], (1, H))
    return wqkv_t, wo_t, cos_t, sin_t


# --------------------------------- wrapper ------------------------------------
@jax.jit
def fused_decoupled_rope_mha(x, wqkv_t, wo_t, cos_t, sin_t):
    B, S, D = x.shape
    # >= 2 parallel grid steps when possible (feeds both v7x TensorCores),
    # otherwise the whole batch goes into a single step (per-step overhead
    # dominates at these sizes).
    n_steps = 2 if (B >= 2 and B % 2 == 0) else 1
    Bt = B // n_steps
    blk = pl.BlockSpec((Bt, S, D), lambda b: (b, 0, 0))
    return pl.pallas_call(
        _fused_mha_kernel,
        out_shape=jax.ShapeDtypeStruct((B, S, D), jnp.float32),
        grid=(n_steps,),
        in_specs=[blk,
                  pl.BlockSpec(wqkv_t.shape, lambda b: (0, 0)),
                  pl.BlockSpec(wo_t.shape, lambda b: (0, 0)),
                  pl.BlockSpec(cos_t.shape, lambda b: (0, 0)),
                  pl.BlockSpec(sin_t.shape, lambda b: (0, 0))],
        out_specs=blk,
        compiler_params=pltpu.CompilerParams(
            dimension_semantics=("parallel",)),
    )(x, wqkv_t, wo_t, cos_t, sin_t)


# -------------------------- pure-JAX reference check --------------------------
def reference_forward(x, qkv_w, wo_w, cos_cached, sin_cached):
    hp = jax.lax.Precision.HIGHEST
    B, S, D = x.shape
    H, hd = N_HEADS, HEAD_DIM
    qkv = jnp.dot(x, qkv_w.T, precision=hp)
    q, k, v = jnp.split(qkv, 3, axis=-1)

    def split_heads(t):
        return t.reshape(B, S, H, hd).transpose(0, 2, 1, 3)

    q, k, v = split_heads(q), split_heads(k), split_heads(v)
    q_nope, q_rope = q[..., :NOPE_DIM], q[..., NOPE_DIM:]
    k_nope, k_rope = k[..., :NOPE_DIM], k[..., NOPE_DIM:]
    cos = cos_cached[:S][None, None]
    sin = sin_cached[:S][None, None]

    def rot(t):
        e, o = t[..., ::2], t[..., 1::2]
        return jnp.concatenate([e * cos - o * sin, o * cos + e * sin], axis=-1)

    q = jnp.concatenate([q_nope, rot(q_rope)], axis=-1)
    k = jnp.concatenate([k_nope, rot(k_rope)], axis=-1)
    scores = jnp.einsum("bhqd,bhkd->bhqk", q, k, precision=hp) / math.sqrt(hd)
    mask = jnp.triu(jnp.ones((S, S), dtype=bool), k=1)
    scores = jnp.where(mask[None, None], -jnp.inf, scores)
    w = jax.nn.softmax(scores, axis=-1)
    out = jnp.einsum("bhqk,bhkd->bhqd", w, v, precision=hp)
    out = out.transpose(0, 2, 1, 3).reshape(B, S, D)
    return jnp.dot(out, wo_w.T, precision=hp)


if __name__ == "__main__":
    key = jax.random.PRNGKey(0)
    k1, k2, k3 = jax.random.split(key, 3)
    B, S = 2, 8

    x = jax.random.normal(k1, (B, S, D_MODEL), dtype=jnp.float32)
    qkv_w = INIT_SCALE * jax.random.normal(k2, (3 * D_MODEL, D_MODEL), jnp.float32)
    wo_w = INIT_SCALE * jax.random.normal(k3, (D_MODEL, D_MODEL), jnp.float32)

    freqs = 1.0 / ROPE_THETA ** (
        jnp.arange(0, ROPE_DIM, 2, dtype=jnp.float32) / ROPE_DIM)
    emb = jnp.outer(jnp.arange(MAX_LEN, dtype=jnp.float32), freqs)
    cos_cached = jnp.cos(emb)   # (MAX_LEN, ROPE_HALF)
    sin_cached = jnp.sin(emb)

    # one-time parameter prep (permutation / transpose / cos-sin tiling hoisted)
    wqkv_t, wo_t, cos_t, sin_t = prepare_params(qkv_w, wo_w,
                                                cos_cached, sin_cached, S)

    out = fused_decoupled_rope_mha(x, wqkv_t, wo_t, cos_t, sin_t)
    out = jax.block_until_ready(out)

    ref = reference_forward(x, qkv_w, wo_w, cos_cached, sin_cached)
    np.testing.assert_allclose(np.asarray(out), np.asarray(ref),
                               rtol=2e-2, atol=1e-3)
    print("KERNEL_OK")
</pallas_src>

<mosaic_0001>
module attributes {stable_mosaic.version = 11 : i64} {
  func.func @_fused_mha_kernel(%arg0: i32, %arg1: memref<1x8x32xf32, #tpu.memory_space<vmem>>, %arg2: memref<32x96xbf16, #tpu.memory_space<vmem>>, %arg3: memref<32x32xbf16, #tpu.memory_space<vmem>>, %arg4: memref<8x8xf32, #tpu.memory_space<vmem>>, %arg5: memref<8x8xf32, #tpu.memory_space<vmem>>, %arg6: memref<1x8x32xf32, #tpu.memory_space<vmem>>) attributes {dimension_semantics = [#tpu.dimension_semantics<parallel>], iteration_bounds = array<i64: 2>, scalar_prefetch = 0 : i64, scratch_operands = 0 : i64, tpu.core_type = #tpu.core_type<tc>, window_params = [{transform_indices = @transform_0, window_bounds = array<i64: 1, 8, 32>}, {pipeline_mode = #tpu.pipeline_mode<synchronous>, transform_indices = @transform_1, window_bounds = array<i64: 32, 96>}, {pipeline_mode = #tpu.pipeline_mode<synchronous>, transform_indices = @transform_2, window_bounds = array<i64: 32, 32>}, {pipeline_mode = #tpu.pipeline_mode<synchronous>, transform_indices = @transform_3, window_bounds = array<i64: 8, 8>}, {pipeline_mode = #tpu.pipeline_mode<synchronous>, transform_indices = @transform_4, window_bounds = array<i64: 8, 8>}, {transform_indices = @transform_5, window_bounds = array<i64: 1, 8, 32>}]} {
    %c0 = arith.constant 0 : index
    %c0_0 = arith.constant 0 : index
    %c0_1 = arith.constant 0 : index
    %0 = vector.load %arg1[%c0, %c0_0, %c0_1] : memref<1x8x32xf32, #tpu.memory_space<vmem>>, vector<1x8x32xf32>
    %1 = vector.shape_cast %0 : vector<1x8x32xf32> to vector<8x32xf32>
    %2 = arith.truncf %1 : vector<8x32xf32> to vector<8x32xbf16>
    %c0_2 = arith.constant 0 : index
    %c0_3 = arith.constant 0 : index
    %3 = vector.load %arg2[%c0_2, %c0_3] : memref<32x96xbf16, #tpu.memory_space<vmem>>, vector<32x96xbf16>
    %c0_4 = arith.constant 0 : index
    %c0_5 = arith.constant 0 : index
    %4 = vector.load %arg3[%c0_4, %c0_5] : memref<32x32xbf16, #tpu.memory_space<vmem>>, vector<32x32xbf16>
    %c0_6 = arith.constant 0 : index
    %c0_7 = arith.constant 0 : index
    %5 = vector.load %arg4[%c0_6, %c0_7] : memref<8x8xf32, #tpu.memory_space<vmem>>, vector<8x8xf32>
    %c0_8 = arith.constant 0 : index
    %c0_9 = arith.constant 0 : index
    %6 = vector.load %arg5[%c0_8, %c0_9] : memref<8x8xf32, #tpu.memory_space<vmem>>, vector<8x8xf32>
    %cst = arith.constant dense<0.000000e+00> : vector<8x96xf32>
    %7 = tpu.matmul %2, %3, %cst {dimension_numbers = #tpu.dot_dimension_numbers<[1], [0], [0], [1], [0, 0, 1, 1], [], []>} : vector<8x32xbf16>, vector<32x96xbf16>, vector<8x96xf32> -> vector<8x96xf32>
    %8 = tpu.iota {dimensions = array<i32: 0>} : vector<8x8xi32>
    %9 = tpu.iota {dimensions = array<i32: 1>} : vector<8x8xi32>
    %10 = arith.cmpi sgt, %9, %8 : vector<8x8xi32>
    %11 = vector.extract_strided_slice %7 {offsets = [0, 0], sizes = [8, 16], strides = [1, 1]} : vector<8x96xf32> to vector<8x16xf32>
    %12 = vector.extract_strided_slice %7 {offsets = [0, 16], sizes = [8, 8], strides = [1, 1]} : vector<8x96xf32> to vector<8x8xf32>
    %13 = vector.extract_strided_slice %7 {offsets = [0, 24], sizes = [8, 8], strides = [1, 1]} : vector<8x96xf32> to vector<8x8xf32>
    %14 = vector.extract_strided_slice %7 {offsets = [0, 32], sizes = [8, 16], strides = [1, 1]} : vector<8x96xf32> to vector<8x16xf32>
    %15 = vector.extract_strided_slice %7 {offsets = [0, 48], sizes = [8, 8], strides = [1, 1]} : vector<8x96xf32> to vector<8x8xf32>
    %16 = vector.extract_strided_slice %7 {offsets = [0, 56], sizes = [8, 8], strides = [1, 1]} : vector<8x96xf32> to vector<8x8xf32>
    %17 = vector.extract_strided_slice %7 {offsets = [0, 64], sizes = [8, 32], strides = [1, 1]} : vector<8x96xf32> to vector<8x32xf32>
    %18 = arith.truncf %17 : vector<8x32xf32> to vector<8x32xbf16>
    %19 = arith.mulf %12, %5 : vector<8x8xf32>
    %20 = arith.mulf %13, %6 : vector<8x8xf32>
    %21 = arith.subf %19, %20 : vector<8x8xf32>
    %22 = arith.truncf %21 : vector<8x8xf32> to vector<8x8xbf16>
    %23 = arith.mulf %13, %5 : vector<8x8xf32>
    %24 = arith.mulf %12, %6 : vector<8x8xf32>
    %25 = arith.addf %23, %24 : vector<8x8xf32>
    %26 = arith.truncf %25 : vector<8x8xf32> to vector<8x8xbf16>
    %27 = arith.mulf %15, %5 : vector<8x8xf32>
    %28 = arith.mulf %16, %6 : vector<8x8xf32>
    %29 = arith.subf %27, %28 : vector<8x8xf32>
    %30 = arith.truncf %29 : vector<8x8xf32> to vector<8x8xbf16>
    %31 = arith.mulf %16, %5 : vector<8x8xf32>
    %32 = arith.mulf %15, %6 : vector<8x8xf32>
    %33 = arith.addf %31, %32 : vector<8x8xf32>
    %34 = arith.truncf %33 : vector<8x8xf32> to vector<8x8xbf16>
    %35 = arith.truncf %11 : vector<8x16xf32> to vector<8x16xbf16>
    %36 = arith.truncf %14 : vector<8x16xf32> to vector<8x16xbf16>
    %37 = vector.extract_strided_slice %35 {offsets = [0, 0], sizes = [8, 4], strides = [1, 1]} : vector<8x16xbf16> to vector<8x4xbf16>
    %38 = vector.extract_strided_slice %36 {offsets = [0, 0], sizes = [8, 4], strides = [1, 1]} : vector<8x16xbf16> to vector<8x4xbf16>
    %cst_10 = arith.constant dense<0.000000e+00> : vector<8x8xf32>
    %39 = tpu.matmul %37, %38, %cst_10 {dimension_numbers = #tpu.dot_dimension_numbers<[1], [1], [0], [0], [0, 0, 1, 0], [], []>} : vector<8x4xbf16>, vector<8x4xbf16>, vector<8x8xf32> -> vector<8x8xf32>
    %40 = vector.extract_strided_slice %22 {offsets = [0, 0], sizes = [8, 2], strides = [1, 1]} : vector<8x8xbf16> to vector<8x2xbf16>
    %41 = vector.extract_strided_slice %30 {offsets = [0, 0], sizes = [8, 2], strides = [1, 1]} : vector<8x8xbf16> to vector<8x2xbf16>
    %cst_11 = arith.constant dense<0.000000e+00> : vector<8x8xf32>
    %42 = tpu.matmul %40, %41, %cst_11 {dimension_numbers = #tpu.dot_dimension_numbers<[1], [1], [0], [0], [0, 0, 1, 0], [], []>} : vector<8x2xbf16>, vector<8x2xbf16>, vector<8x8xf32> -> vector<8x8xf32>
    %43 = arith.addf %39, %42 : vector<8x8xf32>
    %44 = vector.extract_strided_slice %26 {offsets = [0, 0], sizes = [8, 2], strides = [1, 1]} : vector<8x8xbf16> to vector<8x2xbf16>
    %45 = vector.extract_strided_slice %34 {offsets = [0, 0], sizes = [8, 2], strides = [1, 1]} : vector<8x8xbf16> to vector<8x2xbf16>
    %cst_12 = arith.constant dense<0.000000e+00> : vector<8x8xf32>
    %46 = tpu.matmul %44, %45, %cst_12 {dimension_numbers = #tpu.dot_dimension_numbers<[1], [1], [0], [0], [0, 0, 1, 0], [], []>} : vector<8x2xbf16>, vector<8x2xbf16>, vector<8x8xf32> -> vector<8x8xf32>
    %47 = arith.addf %43, %46 : vector<8x8xf32>
    %cst_13 = arith.constant 0xFF800000 : f32
    %48 = vector.broadcast %cst_13 : f32 to vector<8x8xf32>
    %49 = arith.select %10, %48, %47 : vector<8x8xi1>, vector<8x8xf32>
    %cst_14 = arith.constant dense<0xFF800000> : vector<8xf32>
    %50 = vector.multi_reduction <maximumf>, %49, %cst_14 [1] : vector<8x8xf32> to vector<8xf32>
    %51 = vector.shape_cast %50 : vector<8xf32> to vector<8x1xf32>
    %52 = vector.broadcast %51 : vector<8x1xf32> to vector<8x8xf32>
    %53 = arith.subf %49, %52 : vector<8x8xf32>
    %54 = math.exp %53 : vector<8x8xf32>
    %cst_15 = arith.constant dense<0.000000e+00> : vector<8xf32>
    %55 = vector.multi_reduction <add>, %54, %cst_15 [1] : vector<8x8xf32> to vector<8xf32>
    %56 = vector.shape_cast %55 : vector<8xf32> to vector<8x1xf32>
    %57 = tpu.reciprocal %56 {approx = true} : vector<8x1xf32> -> vector<8x1xf32>
    %58 = vector.broadcast %57 : vector<8x1xf32> to vector<8x8xf32>
    %59 = arith.mulf %54, %58 : vector<8x8xf32>
    %60 = vector.extract_strided_slice %18 {offsets = [0, 0], sizes = [8, 8], strides = [1, 1]} : vector<8x32xbf16> to vector<8x8xbf16>
    %61 = arith.truncf %59 : vector<8x8xf32> to vector<8x8xbf16>
    %cst_16 = arith.constant dense<0.000000e+00> : vector<8x8xf32>
    %62 = tpu.matmul %61, %60, %cst_16 {dimension_numbers = #tpu.dot_dimension_numbers<[1], [0], [0], [1], [0, 0, 1, 1], [], []>} : vector<8x8xbf16>, vector<8x8xbf16>, vector<8x8xf32> -> vector<8x8xf32>
    %63 = vector.extract_strided_slice %35 {offsets = [0, 4], sizes = [8, 4], strides = [1, 1]} : vector<8x16xbf16> to vector<8x4xbf16>
    %64 = vector.extract_strided_slice %36 {offsets = [0, 4], sizes = [8, 4], strides = [1, 1]} : vector<8x16xbf16> to vector<8x4xbf16>
    %cst_17 = arith.constant dense<0.000000e+00> : vector<8x8xf32>
    %65 = tpu.matmul %63, %64, %cst_17 {dimension_numbers = #tpu.dot_dimension_numbers<[1], [1], [0], [0], [0, 0, 1, 0], [], []>} : vector<8x4xbf16>, vector<8x4xbf16>, vector<8x8xf32> -> vector<8x8xf32>
    %66 = vector.extract_strided_slice %22 {offsets = [0, 2], sizes = [8, 2], strides = [1, 1]} : vector<8x8xbf16> to vector<8x2xbf16>
    %67 = vector.extract_strided_slice %30 {offsets = [0, 2], sizes = [8, 2], strides = [1, 1]} : vector<8x8xbf16> to vector<8x2xbf16>
    %cst_18 = arith.constant dense<0.000000e+00> : vector<8x8xf32>
    %68 = tpu.matmul %66, %67, %cst_18 {dimension_numbers = #tpu.dot_dimension_numbers<[1], [1], [0], [0], [0, 0, 1, 0], [], []>} : vector<8x2xbf16>, vector<8x2xbf16>, vector<8x8xf32> -> vector<8x8xf32>
    %69 = arith.addf %65, %68 : vector<8x8xf32>
    %70 = vector.extract_strided_slice %26 {offsets = [0, 2], sizes = [8, 2], strides = [1, 1]} : vector<8x8xbf16> to vector<8x2xbf16>
    %71 = vector.extract_strided_slice %34 {offsets = [0, 2], sizes = [8, 2], strides = [1, 1]} : vector<8x8xbf16> to vector<8x2xbf16>
    %cst_19 = arith.constant dense<0.000000e+00> : vector<8x8xf32>
    %72 = tpu.matmul %70, %71, %cst_19 {dimension_numbers = #tpu.dot_dimension_numbers<[1], [1], [0], [0], [0, 0, 1, 0], [], []>} : vector<8x2xbf16>, vector<8x2xbf16>, vector<8x8xf32> -> vector<8x8xf32>
    %73 = arith.addf %69, %72 : vector<8x8xf32>
    %cst_20 = arith.constant 0xFF800000 : f32
    %74 = vector.broadcast %cst_20 : f32 to vector<8x8xf32>
    %75 = arith.select %10, %74, %73 : vector<8x8xi1>, vector<8x8xf32>
    %cst_21 = arith.constant dense<0xFF800000> : vector<8xf32>
    %76 = vector.multi_reduction <maximumf>, %75, %cst_21 [1] : vector<8x8xf32> to vector<8xf32>
    %77 = vector.shape_cast %76 : vector<8xf32> to vector<8x1xf32>
    %78 = vector.broadcast %77 : vector<8x1xf32> to vector<8x8xf32>
    %79 = arith.subf %75, %78 : vector<8x8xf32>
    %80 = math.exp %79 : vector<8x8xf32>
    %cst_22 = arith.constant dense<0.000000e+00> : vector<8xf32>
    %81 = vector.multi_reduction <add>, %80, %cst_22 [1] : vector<8x8xf32> to vector<8xf32>
    %82 = vector.shape_cast %81 : vector<8xf32> to vector<8x1xf32>
    %83 = tpu.reciprocal %82 {approx = true} : vector<8x1xf32> -> vector<8x1xf32>
    %84 = vector.broadcast %83 : vector<8x1xf32> to vector<8x8xf32>
    %85 = arith.mulf %80, %84 : vector<8x8xf32>
    %86 = vector.extract_strided_slice %18 {offsets = [0, 8], sizes = [8, 8], strides = [1, 1]} : vector<8x32xbf16> to vector<8x8xbf16>
    %87 = arith.truncf %85 : vector<8x8xf32> to vector<8x8xbf16>
    %cst_23 = arith.constant dense<0.000000e+00> : vector<8x8xf32>
    %88 = tpu.matmul %87, %86, %cst_23 {dimension_numbers = #tpu.dot_dimension_numbers<[1], [0], [0], [1], [0, 0, 1, 1], [], []>} : vector<8x8xbf16>, vector<8x8xbf16>, vector<8x8xf32> -> vector<8x8xf32>
    %89 = vector.extract_strided_slice %35 {offsets = [0, 8], sizes = [8, 4], strides = [1, 1]} : vector<8x16xbf16> to vector<8x4xbf16>
    %90 = vector.extract_strided_slice %36 {offsets = [0, 8], sizes = [8, 4], strides = [1, 1]} : vector<8x16xbf16> to vector<8x4xbf16>
    %cst_24 = arith.constant dense<0.000000e+00> : vector<8x8xf32>
    %91 = tpu.matmul %89, %90, %cst_24 {dimension_numbers = #tpu.dot_dimension_numbers<[1], [1], [0], [0], [0, 0, 1, 0], [], []>} : vector<8x4xbf16>, vector<8x4xbf16>, vector<8x8xf32> -> vector<8x8xf32>
    %92 = vector.extract_strided_slice %22 {offsets = [0, 4], sizes = [8, 2], strides = [1, 1]} : vector<8x8xbf16> to vector<8x2xbf16>
    %93 = vector.extract_strided_slice %30 {offsets = [0, 4], sizes = [8, 2], strides = [1, 1]} : vector<8x8xbf16> to vector<8x2xbf16>
    %cst_25 = arith.constant dense<0.000000e+00> : vector<8x8xf32>
    %94 = tpu.matmul %92, %93, %cst_25 {dimension_numbers = #tpu.dot_dimension_numbers<[1], [1], [0], [0], [0, 0, 1, 0], [], []>} : vector<8x2xbf16>, vector<8x2xbf16>, vector<8x8xf32> -> vector<8x8xf32>
    %95 = arith.addf %91, %94 : vector<8x8xf32>
    %96 = vector.extract_strided_slice %26 {offsets = [0, 4], sizes = [8, 2], strides = [1, 1]} : vector<8x8xbf16> to vector<8x2xbf16>
    %97 = vector.extract_strided_slice %34 {offsets = [0, 4], sizes = [8, 2], strides = [1, 1]} : vector<8x8xbf16> to vector<8x2xbf16>
    %cst_26 = arith.constant dense<0.000000e+00> : vector<8x8xf32>
    %98 = tpu.matmul %96, %97, %cst_26 {dimension_numbers = #tpu.dot_dimension_numbers<[1], [1], [0], [0], [0, 0, 1, 0], [], []>} : vector<8x2xbf16>, vector<8x2xbf16>, vector<8x8xf32> -> vector<8x8xf32>
    %99 = arith.addf %95, %98 : vector<8x8xf32>
    %cst_27 = arith.constant 0xFF800000 : f32
    %100 = vector.broadcast %cst_27 : f32 to vector<8x8xf32>
    %101 = arith.select %10, %100, %99 : vector<8x8xi1>, vector<8x8xf32>
    %cst_28 = arith.constant dense<0xFF800000> : vector<8xf32>
    %102 = vector.multi_reduction <maximumf>, %101, %cst_28 [1] : vector<8x8xf32> to vector<8xf32>
    %103 = vector.shape_cast %102 : vector<8xf32> to vector<8x1xf32>
    %104 = vector.broadcast %103 : vector<8x1xf32> to vector<8x8xf32>
    %105 = arith.subf %101, %104 : vector<8x8xf32>
    %106 = math.exp %105 : vector<8x8xf32>
    %cst_29 = arith.constant dense<0.000000e+00> : vector<8xf32>
    %107 = vector.multi_reduction <add>, %106, %cst_29 [1] : vector<8x8xf32> to vector<8xf32>
    %108 = vector.shape_cast %107 : vector<8xf32> to vector<8x1xf32>
    %109 = tpu.reciprocal %108 {approx = true} : vector<8x1xf32> -> vector<8x1xf32>
    %110 = vector.broadcast %109 : vector<8x1xf32> to vector<8x8xf32>
    %111 = arith.mulf %106, %110 : vector<8x8xf32>
    %112 = vector.extract_strided_slice %18 {offsets = [0, 16], sizes = [8, 8], strides = [1, 1]} : vector<8x32xbf16> to vector<8x8xbf16>
    %113 = arith.truncf %111 : vector<8x8xf32> to vector<8x8xbf16>
    %cst_30 = arith.constant dense<0.000000e+00> : vector<8x8xf32>
    %114 = tpu.matmul %113, %112, %cst_30 {dimension_numbers = #tpu.dot_dimension_numbers<[1], [0], [0], [1], [0, 0, 1, 1], [], []>} : vector<8x8xbf16>, vector<8x8xbf16>, vector<8x8xf32> -> vector<8x8xf32>
    %115 = vector.extract_strided_slice %35 {offsets = [0, 12], sizes = [8, 4], strides = [1, 1]} : vector<8x16xbf16> to vector<8x4xbf16>
    %116 = vector.extract_strided_slice %36 {offsets = [0, 12], sizes = [8, 4], strides = [1, 1]} : vector<8x16xbf16> to vector<8x4xbf16>
    %cst_31 = arith.constant dense<0.000000e+00> : vector<8x8xf32>
    %117 = tpu.matmul %115, %116, %cst_31 {dimension_numbers = #tpu.dot_dimension_numbers<[1], [1], [0], [0], [0, 0, 1, 0], [], []>} : vector<8x4xbf16>, vector<8x4xbf16>, vector<8x8xf32> -> vector<8x8xf32>
    %118 = vector.extract_strided_slice %22 {offsets = [0, 6], sizes = [8, 2], strides = [1, 1]} : vector<8x8xbf16> to vector<8x2xbf16>
    %119 = vector.extract_strided_slice %30 {offsets = [0, 6], sizes = [8, 2], strides = [1, 1]} : vector<8x8xbf16> to vector<8x2xbf16>
    %cst_32 = arith.constant dense<0.000000e+00> : vector<8x8xf32>
    %120 = tpu.matmul %118, %119, %cst_32 {dimension_numbers = #tpu.dot_dimension_numbers<[1], [1], [0], [0], [0, 0, 1, 0], [], []>} : vector<8x2xbf16>, vector<8x2xbf16>, vector<8x8xf32> -> vector<8x8xf32>
    %121 = arith.addf %117, %120 : vector<8x8xf32>
    %122 = vector.extract_strided_slice %26 {offsets = [0, 6], sizes = [8, 2], strides = [1, 1]} : vector<8x8xbf16> to vector<8x2xbf16>
    %123 = vector.extract_strided_slice %34 {offsets = [0, 6], sizes = [8, 2], strides = [1, 1]} : vector<8x8xbf16> to vector<8x2xbf16>
    %cst_33 = arith.constant dense<0.000000e+00> : vector<8x8xf32>
    %124 = tpu.matmul %122, %123, %cst_33 {dimension_numbers = #tpu.dot_dimension_numbers<[1], [1], [0], [0], [0, 0, 1, 0], [], []>} : vector<8x2xbf16>, vector<8x2xbf16>, vector<8x8xf32> -> vector<8x8xf32>
    %125 = arith.addf %121, %124 : vector<8x8xf32>
    %cst_34 = arith.constant 0xFF800000 : f32
    %126 = vector.broadcast %cst_34 : f32 to vector<8x8xf32>
    %127 = arith.select %10, %126, %125 : vector<8x8xi1>, vector<8x8xf32>
    %cst_35 = arith.constant dense<0xFF800000> : vector<8xf32>
    %128 = vector.multi_reduction <maximumf>, %127, %cst_35 [1] : vector<8x8xf32> to vector<8xf32>
    %129 = vector.shape_cast %128 : vector<8xf32> to vector<8x1xf32>
    %130 = vector.broadcast %129 : vector<8x1xf32> to vector<8x8xf32>
    %131 = arith.subf %127, %130 : vector<8x8xf32>
    %132 = math.exp %131 : vector<8x8xf32>
    %cst_36 = arith.constant dense<0.000000e+00> : vector<8xf32>
    %133 = vector.multi_reduction <add>, %132, %cst_36 [1] : vector<8x8xf32> to vector<8xf32>
    %134 = vector.shape_cast %133 : vector<8xf32> to vector<8x1xf32>
    %135 = tpu.reciprocal %134 {approx = true} : vector<8x1xf32> -> vector<8x1xf32>
    %136 = vector.broadcast %135 : vector<8x1xf32> to vector<8x8xf32>
    %137 = arith.mulf %132, %136 : vector<8x8xf32>
    %138 = vector.extract_strided_slice %18 {offsets = [0, 24], sizes = [8, 8], strides = [1, 1]} : vector<8x32xbf16> to vector<8x8xbf16>
    %139 = arith.truncf %137 : vector<8x8xf32> to vector<8x8xbf16>
    %cst_37 = arith.constant dense<0.000000e+00> : vector<8x8xf32>
    %140 = tpu.matmul %139, %138, %cst_37 {dimension_numbers = #tpu.dot_dimension_numbers<[1], [0], [0], [1], [0, 0, 1, 1], [], []>} : vector<8x8xbf16>, vector<8x8xbf16>, vector<8x8xf32> -> vector<8x8xf32>
    %141 = tpu.concatenate %62, %88, %114, %140 in 1 : vector<8x8xf32>, vector<8x8xf32>, vector<8x8xf32>, vector<8x8xf32> -> vector<8x32xf32>
    %142 = arith.truncf %141 : vector<8x32xf32> to vector<8x32xbf16>
    %cst_38 = arith.constant dense<0.000000e+00> : vector<8x32xf32>
    %143 = tpu.matmul %142, %4, %cst_38 {dimension_numbers = #tpu.dot_dimension_numbers<[1], [0], [0], [1], [0, 0, 1, 1], [], []>} : vector<8x32xbf16>, vector<32x32xbf16>, vector<8x32xf32> -> vector<8x32xf32>
    %144 = vector.shape_cast %143 : vector<8x32xf32> to vector<1x8x32xf32>
    %c0_39 = arith.constant 0 : index
    %c0_40 = arith.constant 0 : index
    %c0_41 = arith.constant 0 : index
    %145 = vector.load %arg6[%c0_39, %c0_40, %c0_41] : memref<1x8x32xf32, #tpu.memory_space<vmem>>, vector<1x8x32xf32>
    tpu.vector_store %arg6[%c0_39, %c0_40, %c0_41], %144 {strides = array<i32>} : memref<1x8x32xf32, #tpu.memory_space<vmem>>, vector<1x8x32xf32>,
    return
  }
  func.func @transform_0(%arg0: i32) -> (i32, i32, i32) {
    %c0_i32 = arith.constant 0 : i32
    %c0_i32_0 = arith.constant 0 : i32
    %c0_i32_1 = arith.constant 0 : i32
    return %arg0, %c0_i32, %c0_i32_0 : i32, i32, i32
  }
  func.func @transform_1(%arg0: i32) -> (i32, i32) {
    %c0_i32 = arith.constant 0 : i32
    %c0_i32_0 = arith.constant 0 : i32
    %c0_i32_1 = arith.constant 0 : i32
    return %c0_i32, %c0_i32_0 : i32, i32
  }
  func.func @transform_2(%arg0: i32) -> (i32, i32) {
    %c0_i32 = arith.constant 0 : i32
    %c0_i32_0 = arith.constant 0 : i32
    %c0_i32_1 = arith.constant 0 : i32
    return %c0_i32, %c0_i32_0 : i32, i32
  }
  func.func @transform_3(%arg0: i32) -> (i32, i32) {
    %c0_i32 = arith.constant 0 : i32
    %c0_i32_0 = arith.constant 0 : i32
    %c0_i32_1 = arith.constant 0 : i32
    return %c0_i32, %c0_i32_0 : i32, i32
  }
  func.func @transform_4(%arg0: i32) -> (i32, i32) {
    %c0_i32 = arith.constant 0 : i32
    %c0_i32_0 = arith.constant 0 : i32
    %c0_i32_1 = arith.constant 0 : i32
    return %c0_i32, %c0_i32_0 : i32, i32
  }
  func.func @transform_5(%arg0: i32) -> (i32, i32, i32) {
    %c0_i32 = arith.constant 0 : i32
    %c0_i32_0 = arith.constant 0 : i32
    %c0_i32_1 = arith.constant 0 : i32
    return %arg0, %c0_i32, %c0_i32_0 : i32, i32, i32
  }
}

</mosaic_0001>

<bundles_post_ra>
// kernel: fused_decoupled_rope_mha.1
= control target key start
LH: loop header
LB: loop body
LE: loop exit
PB: predicated region body
PF: predicated region fallthrough
CT: control target
= control target key end

     0   :  { %10 = vsyncpa [#allocation3], 0  ;;  %s2510_s0 = inlined_call_operand.hbm [shape: f32[2,8,32], index: 0, kind: input, shape index: {}]   ;;  %s2511_s1 = inlined_call_operand.hbm [shape: bf16[32,96], index: 1, kind: input, shape index: {}]   ;;  %s2512_s2 = inlined_call_operand.hbm [shape: bf16[32,32], index: 2, kind: input, shape index: {}]   ;;  %s2513_s3 = inlined_call_operand.vmem [shape: f32[8,8], index: 3, kind: input, shape index: {}]   ;;  %s2514_s4 = inlined_call_operand.hbm [shape: f32[8,8], index: 4, kind: input, shape index: {}]   ;;  %s2515_s5 = inlined_call_operand.hbm [shape: f32[2,8,32], index: 5, kind: output, shape index: {}]  }
   0x1   :  { %12 = vsyncpa [#allocation3 + $0x1], 0 }
   0x2   :  { %13 = vsyncpa [#allocation6], 0 }
   0x3   :  { %14 = vsyncpa [#allocation9], 0 }
   0x4   :  { %15 = vsyncpa [#allocation4], 0 }
   0x5   :  { %17 = vsyncpa [#allocation4 + $0x1], 0  ;;  %s2069_s18 = smov 0   ;;  %s2071_s19 = smov 0  }
   0x6   :  { %s2073_s20 = smov 0   ;;  %s2075_s21 = smov 0  }
   0x7 LB: > { %s2090_s22 = sadd.s32 4294967295, %s1998_s21   ;;  %s1457_s23 = sadd.s32 4294967294, %s1998_s21   ;;  %s1998_s21 = sphi %s2075_s21, %s2538_s21   ;;  %s1994_s20 = sphi %s2073_s20, %s2537_s20   ;;  %s1990_s19 = sphi %s2071_s19, %s2536_s19   ;;  %s1986_s18 = sphi %s2069_s18, %s2535_s18  }
   0x8   : > { %p43_p0 = scmp.ne.s32.totalorder %s1990_s19, %s1986_s18  ;;  %p2516_p1 = scmp.eq.s32.totalorder %s2090_s22, 0 }
   0x9   : > { %p157_p3 = scmp.eq.s32.totalorder %s1457_s23, 1  ;;  %p1458_p5 = scmp.ge.s32.totalorder %s1998_s21, 1 }
   0xa   : > { %p2099_p4 = por %p2516_p1, %p43_p0  ;;  %p164_p7 = scmp.lt.s32.totalorder %s1998_s21, 3 }
   0xb   : > { %p2104_p6 = por %p157_p3, %p43_p0  ;;  %s2000_s27 = smov [#allocation5]  }
   0xc   : > { %s2519_s24 = scalar_select %p2099_p4, 1, 0 }
   0xd   : > { %s2520_s25 = scalar_select %p2104_p6, 1, 0 }
   0xe   : > { %p2109_p8 = pnand %p1458_p5, %p164_p7  ;;  %s176_s28 = sshll.u32 %s2000_s27, 4  ;;  %s2113_s28 = int_to_ptr.vmem [resolvable:$true] %s176_s28 }
   0xf   : > { %s2001_s30 = smov [#allocation7]   ;;  %s2002_s7 = smov [#allocation8]  }
  0x10   : > { %s2521_s26 = scalar_select %p2109_p8, 1, 0 }
  0x11   : > { %p1695_p9 = pneg %p2109_p8  ;;  %s189_s6 = sshll.u32 %s2001_s30, 4  ;;  %s2124_s6 = int_to_ptr.vmem [resolvable:$true] %s189_s6 }
  0x12   : > { %s2126_s8 = sshll.u32 %s2002_s7, 4  ;;  %s1810_s11 = scalar_lea.hbm %s2511_s1, 256  ;;  %s207_s8 = int_to_ptr.vmem [resolvable:$true] %s2126_s8 }
  0x13   : > { %p2120_p11 = pnand %p1695_p9, %p2516_p1  ;;  %p1811_p12 = scmp.ne.s32.totalorder %s2511_s1, %s1810_s11 }
  0x14   : > { %p1817_p5 = scmp.lt.u32.totalorder %s1810_s11, %s2511_s1 }
  0x15   : > { %p2136_p13 = pneg %p2120_p11 }
  0x17   : > { %p1813_p0 = pnand %p2136_p13, %p1811_p12 }
  0x19   : > { %p1814_p3 = pneg %p1813_p0 }
  0x1b   : > { %p1819_p7 = pnand %p1817_p5, %p1814_p3 }
  0x1d   : > { %1822 = shalt.err (!%p1819_p7)
}
  0x1e   : > { %s1823_s17 = scalar_lea.vmem %s2113_s28, 256  ;;  %p1831_p2 = scmp.lt.s32.totalorder %s2113_s28, %s2113_s28 }
  0x1f   : > { %p1824_p9 = scmp.ne.s32.totalorder %s2113_s28, %s1823_s17  ;;  %p1832_p6 = scmp.lt.s32.totalorder %s1823_s17, %s1823_s17 }
  0x21   : > { %p1826_p10 = pnand %p1824_p9, %p2136_p13  ;;  %p1833_p12 = por %p1832_p6, %p1831_p2 }
  0x23   : > { %p1827_p1 = pneg %p1826_p10 }
  0x25   : > { %p1834_p0 = pnand %p1833_p12, %p1827_p1 }
  0x27   : > { %1837 = shalt.err (!%p1834_p0)
}
  0x28   : > { %s2003_s23 = smov 64   ;;  %s2004_s27 = smov 4  }
  0x29   : > { %1698 = dma.hbm_to_vmem [thread:$0]  (!%p2120_p11), %s2511_s1, 256, %s2113_s28, [#allocation6], %s2003_s23, %s2003_s23, %s2004_s27  }
  0x2a   : > { %s1838_s11 = scalar_lea.hbm %s2512_s2, 256 }
  0x2b   : > { %p1839_p2 = scmp.ne.s32.totalorder %s2512_s2, %s1838_s11  ;;  %p1845_p10 = scmp.lt.u32.totalorder %s1838_s11, %s2512_s2 }
  0x2d   : > { %p1841_p1 = pnand %p1839_p2, %p2136_p13 }
  0x2f   : > { %p1842_p6 = pneg %p1841_p1 }
  0x31   : > { %p1847_p3 = pnand %p1845_p10, %p1842_p6 }
  0x33   : > { %1850 = shalt.err (!%p1847_p3)
}
  0x34   : > { %s1851_s28 = scalar_lea.vmem %s2124_s6, 256  ;;  %p1859_p12 = scmp.lt.s32.totalorder %s2124_s6, %s2124_s6 }
  0x35   : > { %p1852_p5 = scmp.ne.s32.totalorder %s2124_s6, %s1851_s28  ;;  %p1860_p0 = scmp.lt.s32.totalorder %s1851_s28, %s1851_s28 }
  0x37   : > { %p1854_p7 = pnand %p1852_p5, %p2136_p13  ;;  %p1861_p2 = por %p1860_p0, %p1859_p12 }
  0x39   : > { %p1855_p9 = pneg %p1854_p7 }
  0x3b   : > { %p1862_p1 = pnand %p1861_p2, %p1855_p9 }
  0x3d   : > { %1865 = shalt.err (!%p1862_p1)
}
  0x3e   : > { %1701 = dma.hbm_to_vmem [thread:$0]  (!%p2120_p11), %s2512_s2, 256, %s2124_s6, [#allocation6], %s2003_s23, %s2003_s23, %s2004_s27  }
  0x3f   : > { %s1866_s10 = scalar_lea.hbm %s2514_s4, 128 }
  0x40   : > { %p1867_p6 = scmp.ne.s32.totalorder %s2514_s4, %s1866_s10  ;;  %p1873_p5 = scmp.lt.u32.totalorder %s1866_s10, %s2514_s4 }
  0x42   : > { %p1869_p10 = pnand %p1867_p6, %p2136_p13 }
  0x44   : > { %p1870_p3 = pneg %p1869_p10 }
  0x46   : > { %p1875_p7 = pnand %p1873_p5, %p1870_p3 }
  0x48   : > { %1878 = shalt.err (!%p1875_p7)
}
  0x49   : > { %s1879_s16 = scalar_lea.vmem %s207_s8, 128  ;;  %p1887_p2 = scmp.lt.s32.totalorder %s207_s8, %s207_s8 }
  0x4a   : > { %p1880_p9 = scmp.ne.s32.totalorder %s207_s8, %s1879_s16  ;;  %p1888_p1 = scmp.lt.s32.totalorder %s1879_s16, %s1879_s16 }
  0x4c   : > { %p1882_p12 = pnand %p1880_p9, %p2136_p13  ;;  %p1889_p4 = por %p1888_p1, %p1887_p2 }
  0x4e   : > { %p1883_p0 = pneg %p1882_p12 }
  0x50   : > { %p1890_p8 = pnand %p1889_p4, %p1883_p0 }
  0x52   : > { %1893 = shalt.err (!%p1890_p8)
}
  0x53   : > { %1704 = dma.hbm_to_vmem [thread:$0]  (!%p2120_p11), %s2514_s4, 128, %s207_s8, [#allocation9]  }
  0x54   : > { %s2200_s14 = sadd.s32 1, %s1998_s21   ;;  %s30_s29 = sadd.s32 1, %s1994_s20 }
  0x55   : > { %s27_s27 = ssub.s32 %s1998_s21, %s2200_s14  ;;  %p37_p8 = scmp.ne.s32.totalorder %s1994_s20, %s1990_s19 }
  0x56   : > { %p28_p4 = scmp.eq.s32.totalorder %s27_s27, 0  ;;  %p38_p13 = scmp.eq.s32.totalorder %s1998_s21, 0 }
  0x57   : > { %p1716_p6 = scmp.lt.s32.totalorder %s1998_s21, 2  ;;  %p2524_p3 = scmp.eq.s32.totalorder %s2090_s22, 1 }
  0x58   : > { %s2210_s28 = scalar_select %p28_p4, %s1994_s20, %s30_s29  }
  0x59   : > { %p39_p10 = por %p38_p13, %p37_p8  ;;  %p2214_p5 = por %p2524_p3, %p37_p8 }
  0x5a   : > { %s217_s30 = sand.u32 1, %s1994_s20   ;;  %s1464_s7 = sshll.u32 %s1998_s21, 7 }
  0x5b   : > { %s1463_s8 = sshll.u32 %s217_s30, 3  ;;  %s2223_s11 = scalar_lea.hbm %s2510_s0, %s1464_s7 }
  0x5c   : > { %s221_s12 = scalar_lea.vmem [#allocation2], %s1463_s8  ;;  %p2225_p11 = pnand %p1716_p6, %p39_p10 }
  0x5d   : > { %s228_s13 = sshll.u32 %s221_s12, 4  ;;  %s218_s16 = scalar_lea.sflag [#allocation3], %s217_s30  ;;  %s2229_s13 = int_to_ptr.vmem [resolvable:$true] %s228_s13 }
  0x5e   : > { %s1894_s6 = scalar_lea.hbm %s2223_s11, 128  ;;  %p1896_p9 = pneg %p2225_p11 }
  0x5f   : > { %p1895_p7 = scmp.ne.s32.totalorder %s2223_s11, %s1894_s6  ;;  %s1899_s29 = scalar_lea.hbm %s2510_s0, 256 }
  0x60   : > { %p1900_p2 = scmp.lt.u32.totalorder %s2223_s11, %s2510_s0  ;;  %p1901_p1 = scmp.lt.u32.totalorder %s1899_s29, %s1894_s6 }
  0x61   : > { %p1897_p12 = pnand %p1896_p9, %p1895_p7  ;;  %p1903_p8 = scmp.lt.u32.totalorder %s1894_s6, %s2223_s11 }
  0x62   : > { %p1902_p4 = por %p1901_p1, %p1900_p2 }
  0x63   : > { %p1898_p0 = pneg %p1897_p12 }
  0x64   : > { %p1904_p13 = por %p1903_p8, %p1902_p4 }
  0x66   : > { %p1905_p6 = pnand %p1904_p13, %p1898_p0 }
  0x68   : > { %1908 = shalt.err (!%p1905_p6)
}
  0x69   : > { %s1909_s30 = scalar_lea.vmem %s2229_s13, 128  ;;  %s2005_s9 = smov [#allocation2]  }
  0x6a   : > { %p1910_p10 = scmp.ne.s32.totalorder %s2229_s13, %s1909_s30  ;;  %s1914_s10 = sshll.u32 %s2005_s9, 4  ;;  %s1915_s10 = int_to_ptr.vmem [resolvable:$false] %s1914_s10 }
  0x6b   : > { %s1916_s12 = scalar_lea.vmem %s1915_s10, 256  ;;  %p1917_p12 = scmp.lt.s32.totalorder %s2229_s13, %s1915_s10 }
  0x6c   : > { %p1912_p3 = pnand %p1910_p10, %p1896_p9  ;;  %p1918_p2 = scmp.lt.s32.totalorder %s1916_s12, %s1909_s30 }
  0x6e   : > { %p1913_p7 = pneg %p1912_p3  ;;  %p1919_p1 = por %p1918_p2, %p1917_p12 }
  0x70   : > { %p1920_p4 = pnand %p1919_p1, %p1913_p7 }
  0x72   : > { %1923 = shalt.err (!%p1920_p4)
}
  0x73   : > { %1708 = dma.hbm_to_vmem [thread:$0]  (!%p2225_p11), %s2223_s11, 128, %s2229_s13, %s218_s16  }
  0x74   : > { %p2527_p0 = scmp.ne.s32.totalorder %s2521_s26, 0 }
  0x75   : > { %s2259_s6 = sand.u32 (!%p2527_p0), 1, %s1990_s19   ;;  %p2528_p9 = scmp.ne.s32.totalorder (!%p2527_p0), %s2519_s24, 0 }
  0x76   : > { %237 = sbr.rel (%p2527_p0) target bundleno = 3392 (0xd40), region = 40  ;;  %s1466_s23 = sshll.u32 (!%p2527_p0), %s2259_s6, 3 }
  0x77   : > { %s240_s27 = scalar_lea.sflag (!%p2527_p0), [#allocation3], %s2259_s6  ;;  %s243_s29 = scalar_lea.vmem (!%p2527_p0), [#allocation2], %s1466_s23 }
  0x7d   : > { %1969 = dma.done.wait (%p2528_p9), %s240_s27, 128  }
  0x7e   : > { %1971 = vsyncadd (%p2528_p9), %s240_s27, 4294967168  ;;  %p2529_p11 = scmp.eq.s32.totalorder %s2090_s22, 0 }
  0x80   : > { %1973 = dma.done.wait (%p2529_p11), [#allocation6], 512   ;;  %p2530_p8 = pmov %p2529_p11 }
  0x82   : > { %1975 = vsyncadd (%p2530_p8), [#allocation6], 4294966784  ;;  %p2531_p13 = pmov %p2530_p8 }
  0x83   : > { %p2532_p6 = pmov %p2530_p8 }
  0x84   : > { %1977 = dma.done.wait (%p2531_p13), [#allocation9], 128  }
  0x85   : > { %1979 = vsyncadd (%p2532_p6), [#allocation9], 4294967168  ;;  %v2006_v0 = vmov 0.0   ;;  %vm2007_vm0 = vmmov 0   ;;  %v1790_v1 = vld [vmem:[#allocation5] sm:$0xff]   ;;  %v1791_v2 = vld [vmem:[#allocation5 + $0x8] sm:$0xff]   ;;  %v351_v48 = vlaneseq }
  0x86   : > { %1535 = vmatprep.subr.bf16.mxu0 %v2006_v0  ;;  %1539 = vmatprep.mubr.msk.bf16.mxu0 %vm2007_vm0, %v2006_v0  ;;  %v283_v3 = vld [vmem:[%s243_s29] sm:$0xff]  ;;  %v294_v4 = vld [vmem:[#allocation8] sm:$0xff]  ;;  %s2008_s24 = smov 56   ;;  %s2009_s26 = smov 48   ;;  %vm307_vm1 = vcmask 261120   ;;  %vm421_vm2 = vcmask 15360  }
  0x87   : > { %1543 = vmatprep.subr.bf16.mxu1 %v2006_v0  ;;  %1545 = vmatprep.mubr.msk.bf16.mxu1 %vm2007_vm0, %v2006_v0  ;;  %v284_v5 = vpack.c.bf16 %v283_v3, %v283_v3  ;;  %s2010_s11 = smov 24   ;;  %v293_v6 = vld [vmem:[%s2513_s3] sm:$0xff]  ;;  %s2011_s16 = smov 16   ;;  %vm471_vm3 = vcmask 31744   ;;  %v2334_v49 = vshrl.u32 %v351_v48, 7  ;;  %v2336_v50 = vand.u32 127, %v351_v48 }
  0x88   : > { %1536 = vmatpush3.bf16.msra.mxu0 %v1790_v1  ;;  %391 = vrot.lane.b32.xlu0 %v294_v4, %s2008_s24  ;;  %s2012_s7 = smov 120   ;;  %s2013_s8 = smov 8   ;;  %vm572_vm5 = vcmask 64512   ;;  %vm590_vm6 = vcmask 1043456   ;;  %vm1283_vm7 = vcmask 130048   ;;  %vm1285_vm8 = vcmask 195584  }
  0x89   : > { %1537 = vmatprep.subr.bf16.mxu0 %v2006_v0  ;;  %405 = vrot.lane.b32.xlu1 %v294_v4, %s2009_s26  ;;  %s2014_s30 = smov 80   ;;  %s2015_s9 = smov 112   ;;  %vm355_vm4 = vcmp.gt.s32.totalorder %v2336_v50, %v2334_v49 }
  0x8a   : > { %s2016_s10 = smov 96   ;;  %s2017_s12 = smov 72  }
  0x8b   : > { %s2018_s27 = smov 104   ;;  %s2019_s29 = smov 78  }
  0x8c   : > { %1538 = vmatpush3.bf16.msra.mxu0 %v1791_v2  ;;  %363 = vrot.lane.b32.xlu0 %v294_v4, %s2010_s11  ;;  %s2020_s13 = smov 110   ;;  %s2021_s15 = smov 124  }
  0x8d   : > { %1561 = vmatprep.subr.bf16.mxu0 %v2006_v0  ;;  %377 = vrot.lane.b32.xlu1 %v294_v4, %s2011_s16 }
  0x8f   : > { %1540 = vmatmul.mubr.msk.bf16.vlgmr.msra.gmra.mrb[0].mxu0 %vm307_vm1, %v284_v5 }
  0x90   : > { %1563 = vmatprep.mubr.msk.bf16.mxu0 %vm2007_vm0, %v2006_v0  ;;  %387 = vrot.lane.b32.xlu0 %v293_v6, %s2009_s26 }
  0x94   : > { %358 = vrot.lane.b32.xlu0 %v293_v6, %s2011_s16 }
  0x98   : > { %401 = vrot.lane.b32.xlu0 %v293_v6, %s2008_s24 }
  0x9c   : > { %373 = vrot.lane.b32.xlu0 %v293_v6, %s2010_s11 }
  0xfa   : > { %v392_v7 = vpop.permute.xlu0 %391 }
  0xfb   : > { %v406_v14 = vpop.permute.xlu1 %405 }
  0xfe   : > { %v364_v13 = vpop.permute.xlu0 %363 }
  0xff   : > { %v378_v17 = vpop.permute.xlu1 %377 }
 0x102   : > { %v388_v19 = vpop.permute.xlu0 %387 }
 0x106   : > { %v359_v20 = vpop.permute.xlu0 %358 }
 0x10a   : > { %v402_v24 = vpop.permute.xlu0 %401 }
 0x10e   : > { %v374_v32 = vpop.permute.xlu0 %373 }
 0x162   : > { %v345_v8 = vpop.f32.mrb[0].mxu0 }
 0x163   : > { %v1541_v9 = vpop.f32.mrb[1].mxu0  ;;  %v394_v10 = vmul.f32 %v392_v7, %v345_v8  ;;  %v366_v15 = vmul.f32 %v364_v13, %v345_v8  ;;  %v408_v16 = vmul.f32 %v406_v14, %v345_v8  ;;  %v380_v18 = vmul.f32 %v378_v17, %v345_v8 }
 0x164   : > { %v348_v11 = vpop.f32.mrb[2].mxu0  ;;  %v390_v21 = vmul.f32 %v388_v19, %v345_v8  ;;  %v361_v26 = vmul.f32 %v359_v20, %v345_v8  ;;  %v2306_v29 = vpack.c.bf16 %v345_v8, %v345_v8  ;;  %v404_v31 = vmul.f32 %v402_v24, %v345_v8 }
 0x165   : > { %396 = vrot.lane.b32.xlu1 %v394_v10, %s2012_s7  ;;  %v1542_v12 = vpop.f32.mrb[3].mxu0  ;;  %v376_v36 = vmul.f32 %v374_v32, %v345_v8 }
 0x169   : > { %368 = vrot.lane.b32.xlu1 %v366_v15, %s2012_s7 }
 0x16d   : > { %410 = vrot.lane.b32.xlu1 %v408_v16, %s2013_s8 }
 0x171   : > { %382 = vrot.lane.b32.xlu1 %v380_v18, %s2013_s8 }
 0x1d7   : > { %v397_v22 = vpop.permute.xlu1 %396 }
 0x1d8   : > { %v399_v23 = vsub.f32 %v390_v21, %v397_v22 }
 0x1da   : > { %v2303_v25 = vpack.c.bf16 %v399_v23, %v399_v23 }
 0x1db   : > { %v369_v27 = vpop.permute.xlu1 %368 }
 0x1dc   : > { %v371_v28 = vsub.f32 %v361_v26, %v369_v27  ;;  %419 = vrot.lane.b32.xlu0 %v2303_v25, %s2014_s30  ;;  %s2022_s30 = smov 102  }
 0x1de   : > { %v2308_v30 = vpack.c.bf16 %v371_v28, %v371_v28 }
 0x1df   : > { %v411_v33 = vpop.permute.xlu1 %410 }
 0x1e0   : > { %v413_v34 = vadd.f32 %v411_v33, %v404_v31  ;;  %416 = vrot.lane.b32.xlu1 %v2308_v30, %s2015_s9  ;;  %469 = vrot.lane.b32.xlu0 %v2306_v29, %s2016_s10  ;;  %s2023_s9 = smov 64   ;;  %s2024_s10 = smov 92  }
 0x1e2   : > { %v2312_v35 = vpack.c.bf16 %v413_v34, %v413_v34 }
 0x1e3   : > { %v383_v37 = vpop.permute.xlu1 %382 }
 0x1e4   : > { %v385_v38 = vadd.f32 %v383_v37, %v376_v36  ;;  %522 = vrot.lane.b32.xlu1 %v2312_v35, %s2017_s12  ;;  %s2025_s12 = smov 70  }
 0x1e6   : > { %v2315_v39 = vpack.c.bf16 %v385_v38, %v385_v38 }
 0x1e8   : > { %519 = vrot.lane.b32.xlu0 %v2315_v39, %s2018_s27  ;;  %s2026_s27 = smov 108  }
 0x24e   : > { %v420_v40 = vpop.permute.xlu0 %419 }
 0x24f   : > { %v426_v41 = vsel %vm421_vm2, %v420_v40, 0 }
 0x250   : > { %1544 = vmatpush3.bf16.xpose.msra.mxu1 %v426_v41 }
 0x251   : > { %1549 = vmatprep.subr.bf16.mxu1 %v2006_v0 }
 0x252   : > { %v470_v42 = vpop.permute.xlu0 %469  ;;  %v417_v43 = vpop.permute.xlu1 %416 }
 0x253   : > { %v476_v44 = vsel %vm471_vm3, %v470_v42, 0 }
 0x256   : > { %v523_v45 = vpop.permute.xlu1 %522 }
 0x257   : > { %1546 = vmatmul.mubr.msk.bf16.vlgmr.msra.gmra.mrb[0].mxu1 %vm421_vm2, %v417_v43  ;;  %v528_v46 = vsel %vm421_vm2, %v523_v45, 0 }
 0x258   : > { %1550 = vmatpush3.bf16.xpose.msra.mxu1 %v476_v44  ;;  %1551 = vmatprep.mubr.msk.bf16.mxu1 %vm2007_vm0, %v2006_v0 }
 0x259   : > { %1555 = vmatprep.subr.bf16.mxu1 %v2006_v0 }
 0x25a   : > { %v520_v47 = vpop.permute.xlu0 %519 }
 0x263   : > { %1552 = vmatmul.mubr.msk.bf16.vlgmr.msra.gmra.mrb[0].mxu1 %vm471_vm3, %v2306_v29 }
 0x264   : > { %1556 = vmatpush3.bf16.xpose.msra.mxu1 %v528_v46  ;;  %1557 = vmatprep.mubr.msk.bf16.mxu1 %vm2007_vm0, %v2006_v0 }
 0x265   : > { %1585 = vmatprep.subr.bf16.mxu1 %v2006_v0 }
 0x26f   : > { %1558 = vmatmul.mubr.msk.bf16.vlgmr.msra.gmra.mrb[0].mxu1 %vm421_vm2, %v520_v47 }
 0x270   : > { %1587 = vmatprep.mubr.msk.bf16.mxu1 %vm2007_vm0, %v2006_v0 }
 0x342   : > { %v564_v51 = vpop.f32.mrb[0].mxu1 }
 0x343   : > { %v571_v52 = vsel %vm355_vm4, -inf, %v564_v51  ;;  %v1559_v53 = vpop.f32.mrb[1].mxu1 }
 0x344   : > { %v567_v54 = vpop.f32.mrb[2].mxu1  ;;  %v573_v55 = vsel %vm572_vm5, %v571_v52, -inf }
 0x345   : > { %574 = vmax.xlane.f32.xlu1 %v573_v55  ;;  %v1560_v56 = vpop.f32.mrb[3].mxu1 }
 0x356   : > { %636 = vrot.lane.b32.xlu1 %v2303_v25, %s2019_s29  ;;  %s2027_s29 = smov 100  }
 0x35a   : > { %634 = vrot.lane.b32.xlu1 %v2308_v30, %s2020_s13  ;;  %s2030_s13 = smov 68  }
 0x35e   : > { %684 = vrot.lane.b32.xlu1 %v2306_v29, %s2021_s15  ;;  %s2031_s15 = smov 74  }
 0x362   : > { %734 = vrot.lane.b32.xlu1 %v2315_v39, %s2022_s30  ;;  %s2032_s30 = smov 106  }
 0x3d2   : > { %v575_v57 = vpop.xlane.xlu1 %574 }
 0x3d3   : > { %v576_v58 = vsub.f32 %v571_v52, %v575_v57 }
 0x3d5   : > { %v577_v59 = vmul.f32 1.442695, %v576_v58 }
 0x3d6   : > { %v637_v4 = vpop.permute.xlu1 %636 }
 0x3d7   : > { %1794 = vpow2.f32 %v577_v59  ;;  %v642_v6 = vsel %vm421_vm2, %v637_v4, 0 }
 0x3da   : > { %v635_v8 = vpop.permute.xlu1 %634 }
 0x3de   : > { %v685_v11 = vpop.permute.xlu1 %684 }
 0x3e1   : > { %v1795_v60 = vpop.eup %1794 }
 0x3e2   : > { %v579_v61 = vsel %vm572_vm5, %v1795_v60, 0.0  ;;  %v735_v13 = vpop.permute.xlu1 %734 }
 0x3e3   : > { %580 = vadd.xlane.f32.xlu0 %v579_v61 }
 0x3f9   : > { %585 = vrot.lane.b32.xlu0 %v2306_v29, %s2023_s9  ;;  %s2033_s9 = smov 116  }
 0x3fd   : > { %686 = vrot.lane.b32.xlu0 %v2306_v29, %s2024_s10  ;;  %s2034_s10 = smov 98  }
 0x401   : > { %736 = vrot.lane.b32.xlu0 %v2312_v35, %s2025_s12  ;;  %s2035_s12 = smov 84  }
 0x470   : > { %v581_v62 = vpop.xlane.xlu0 %580 }
 0x471   : > { %1796 = vrcp.f32 %v581_v62 }
 0x474   : > { %v586_v63 = vpop.permute.xlu0 %585 }
 0x475   : > { %v592_v1 = vsel %vm590_vm6, %v586_v63, 0 }
 0x476   : > { %1562 = vmatpush3.bf16.msra.mxu0 %v592_v1 }
 0x477   : > { %1567 = vmatprep.subr.bf16.mxu0 %v2006_v0 }
 0x478   : > { %v687_v7 = vpop.permute.xlu0 %686 }
 0x479   : > { %v692_v9 = vsel %vm471_vm3, %v687_v7, 0 }
 0x47b   : > { %v1797_v2 = vpop.eup %1796 }
 0x47c   : > { %v583_v3 = vmul.f32 %v1797_v2, %v1795_v60  ;;  %v737_v10 = vpop.permute.xlu0 %736 }
 0x47d   : > { %v742_v12 = vsel %vm421_vm2, %v737_v10, 0 }
 0x47e   : > { %v584_v5 = vpack.c.bf16 %v583_v3, %v583_v3 }
 0x480   : > { %1564 = vmatmul.mubr.msk.bf16.vlgmr.msra.gmra.mrb[4].mxu0 %vm572_vm5, %v584_v5 }
 0x481   : > { %1568 = vmatpush3.bf16.xpose.msra.mxu0 %v642_v6  ;;  %1569 = vmatprep.mubr.msk.bf16.mxu0 %vm2007_vm0, %v2006_v0 }
 0x482   : > { %1573 = vmatprep.subr.bf16.mxu0 %v2006_v0 }
 0x488   : > { %1570 = vmatmul.mubr.msk.bf16.vlgmr.msra.gmra.mrb[8].mxu0 %vm421_vm2, %v635_v8 }
 0x489   : > { %1574 = vmatpush3.bf16.xpose.msra.mxu0 %v692_v9  ;;  %1575 = vmatprep.mubr.msk.bf16.mxu0 %vm2007_vm0, %v2006_v0 }
 0x48a   : > { %1579 = vmatprep.subr.bf16.mxu0 %v2006_v0 }
 0x494   : > { %1576 = vmatmul.mubr.msk.bf16.vlgmr.msra.gmra.mrb[8].mxu0 %vm471_vm3, %v685_v11 }
 0x495   : > { %1580 = vmatpush3.bf16.xpose.msra.mxu0 %v742_v12  ;;  %1581 = vmatprep.mubr.msk.bf16.mxu0 %vm2007_vm0, %v2006_v0 }
 0x496   : > { %1609 = vmatprep.subr.bf16.mxu0 %v2006_v0 }
 0x4a0   : > { %1582 = vmatmul.mubr.msk.bf16.vlgmr.msra.gmra.mrb[8].mxu0 %vm421_vm2, %v735_v13 }
 0x4a1   : > { %1611 = vmatprep.mubr.msk.bf16.mxu0 %vm2007_vm0, %v2006_v0 }
 0x553   : > { %v2372_v14 = vpop.f32.mrb[4].mxu0 }
 0x554   : > { %v1565_v15 = vpop.f32.mrb[5].mxu0 }
 0x555   : > { %v631_v16 = vpop.f32.mrb[6].mxu0 }
 0x556   : > { %v1566_v17 = vpop.f32.mrb[7].mxu0 }
 0x573   : > { %v778_v18 = vpop.f32.mrb[8].mxu0 }
 0x574   : > { %v785_v19 = vsel %vm355_vm4, -inf, %v778_v18  ;;  %v1583_v20 = vpop.f32.mrb[9].mxu0 }
 0x575   : > { %v781_v21 = vpop.f32.mrb[10].mxu0  ;;  %v786_v22 = vsel %vm572_vm5, %v785_v19, -inf }
 0x576   : > { %787 = vmax.xlane.f32.xlu0 %v786_v22  ;;  %v1584_v23 = vpop.f32.mrb[11].mxu0 }
 0x58c   : > { %798 = vrot.lane.b32.xlu0 %v2306_v29, %s2008_s24  ;;  %s2028_s24 = smov 76  }
 0x590   : > { %846 = vrot.lane.b32.xlu0 %v2308_v30, %s2026_s27  ;;  %s2036_s27 = smov 66  }
 0x594   : > { %896 = vrot.lane.b32.xlu0 %v2306_v29, %s2012_s7  ;;  %s2029_s7 = smov 88  }
 0x598   : > { %946 = vrot.lane.b32.xlu0 %v2315_v39, %s2027_s29 }
 0x603   : > { %v788_v24 = vpop.xlane.xlu0 %787 }
 0x604   : > { %v789_v26 = vsub.f32 %v785_v19, %v788_v24 }
 0x606   : > { %v790_v27 = vmul.f32 1.442695, %v789_v26 }
 0x607   : > { %v799_v28 = vpop.permute.xlu0 %798 }
 0x608   : > { %1798 = vpow2.f32 %v790_v27  ;;  %v804_v31 = vsel %vm590_vm6, %v799_v28, 0 }
 0x609   : > { %1586 = vmatpush3.bf16.msra.mxu1 %v804_v31 }
 0x60a   : > { %1591 = vmatprep.subr.bf16.mxu1 %v2006_v0 }
 0x60b   : > { %v847_v43 = vpop.permute.xlu0 %846 }
 0x60f   : > { %v897_v46 = vpop.permute.xlu0 %896 }
 0x612   : > { %v1799_v32 = vpop.eup %1798 }
 0x613   : > { %v792_v33 = vsel %vm572_vm5, %v1799_v32, 0.0  ;;  %v947_v48 = vpop.permute.xlu0 %946 }
 0x614   : > { %793 = vadd.xlane.f32.xlu1 %v792_v33 }
 0x625   : > { %848 = vrot.lane.b32.xlu1 %v2303_v25, %s2028_s24 }
 0x629   : > { %898 = vrot.lane.b32.xlu1 %v2306_v29, %s2029_s7 }
 0x62d   : > { %948 = vrot.lane.b32.xlu1 %v2312_v35, %s2030_s13  ;;  %s1345_s13 = scalar_lea.sflag [#allocation4], %s2259_s6 }
 0x6a1   : > { %v794_v34 = vpop.xlane.xlu1 %793 }
 0x6a2   : > { %1800 = vrcp.f32 %v794_v34 }
 0x6a5   : > { %v849_v38 = vpop.permute.xlu1 %848 }
 0x6a6   : > { %v854_v41 = vsel %vm421_vm2, %v849_v38, 0  ;;  %v1793_v38 = vld [vmem:[#allocation7 + $0x8] sm:$0xff]  }
 0x6a9   : > { %v899_v42 = vpop.permute.xlu1 %898 }
 0x6aa   : > { %v904_v44 = vsel %vm471_vm3, %v899_v42, 0 }
 0x6ac   : > { %v1801_v36 = vpop.eup %1800 }
 0x6ad   : > { %v796_v37 = vmul.f32 %v1801_v36, %v1799_v32  ;;  %v949_v45 = vpop.permute.xlu1 %948 }
 0x6ae   : > { %v954_v47 = vsel %vm421_vm2, %v949_v45, 0 }
 0x6af   : > { %v797_v40 = vpack.c.bf16 %v796_v37, %v796_v37  ;;  %v1792_v37 = vld [vmem:[#allocation7] sm:$0xff]  }
 0x6b1   : > { %1588 = vmatmul.mubr.msk.bf16.vlgmr.msra.gmra.mrb[4].mxu1 %vm572_vm5, %v797_v40 }
 0x6b2   : > { %1592 = vmatpush3.bf16.xpose.msra.mxu1 %v854_v41  ;;  %1593 = vmatprep.mubr.msk.bf16.mxu1 %vm2007_vm0, %v2006_v0 }
 0x6b3   : > { %1597 = vmatprep.subr.bf16.mxu1 %v2006_v0 }
 0x6b9   : > { %1594 = vmatmul.mubr.msk.bf16.vlgmr.msra.gmra.mrb[8].mxu1 %vm421_vm2, %v847_v43 }
 0x6ba   : > { %1598 = vmatpush3.bf16.xpose.msra.mxu1 %v904_v44  ;;  %1599 = vmatprep.mubr.msk.bf16.mxu1 %vm2007_vm0, %v2006_v0 }
 0x6bb   : > { %1603 = vmatprep.subr.bf16.mxu1 %v2006_v0 }
 0x6c5   : > { %1600 = vmatmul.mubr.msk.bf16.vlgmr.msra.gmra.mrb[8].mxu1 %vm471_vm3, %v897_v46 }
 0x6c6   : > { %1604 = vmatpush3.bf16.xpose.msra.mxu1 %v954_v47  ;;  %1605 = vmatprep.mubr.msk.bf16.mxu1 %vm2007_vm0, %v2006_v0 }
 0x6c7   : > { %1633 = vmatprep.subr.bf16.mxu1 %v2006_v0 }
 0x6d1   : > { %1606 = vmatmul.mubr.msk.bf16.vlgmr.msra.gmra.mrb[8].mxu1 %vm421_vm2, %v947_v48 }
 0x6d2   : > { %1635 = vmatprep.mubr.msk.bf16.mxu1 %vm2007_vm0, %v2006_v0 }
 0x784   : > { %v2408_v51 = vpop.f32.mrb[4].mxu1 }
 0x785   : > { %v1589_v52 = vpop.f32.mrb[5].mxu1 }
 0x786   : > { %v843_v53 = vpop.f32.mrb[6].mxu1 }
 0x787   : > { %v1590_v54 = vpop.f32.mrb[7].mxu1 }
 0x7a4   : > { %v990_v55 = vpop.f32.mrb[8].mxu1 }
 0x7a5   : > { %v997_v56 = vsel %vm355_vm4, -inf, %v990_v55  ;;  %v1607_v57 = vpop.f32.mrb[9].mxu1 }
 0x7a6   : > { %v993_v58 = vpop.f32.mrb[10].mxu1  ;;  %v998_v59 = vsel %vm572_vm5, %v997_v56, -inf }
 0x7a7   : > { %999 = vmax.xlane.f32.xlu1 %v998_v59  ;;  %v1608_v60 = vpop.f32.mrb[11].mxu1 }
 0x7b8   : > { %1060 = vrot.lane.b32.xlu1 %v2303_v25, %s2031_s15 }
 0x7bc   : > { %1058 = vrot.lane.b32.xlu1 %v2308_v30, %s2032_s30 }
 0x7c0   : > { %1108 = vrot.lane.b32.xlu1 %v2306_v29, %s2033_s9 }
 0x7c4   : > { %1158 = vrot.lane.b32.xlu1 %v2315_v39, %s2034_s10 }
 0x834   : > { %v1000_v61 = vpop.xlane.xlu1 %999 }
 0x835   : > { %v1001_v62 = vsub.f32 %v997_v56, %v1000_v61 }
 0x837   : > { %v1002_v63 = vmul.f32 1.442695, %v1001_v62 }
 0x838   : > { %v1061_v5 = vpop.permute.xlu1 %1060 }
 0x839   : > { %1802 = vpow2.f32 %v1002_v63  ;;  %v1066_v7 = vsel %vm421_vm2, %v1061_v5, 0 }
 0x83c   : > { %v1059_v8 = vpop.permute.xlu1 %1058 }
 0x840   : > { %v1109_v11 = vpop.permute.xlu1 %1108 }
 0x843   : > { %v1803_v1 = vpop.eup %1802 }
 0x844   : > { %v1004_v2 = vsel %vm572_vm5, %v1803_v1, 0.0  ;;  %v1159_v13 = vpop.permute.xlu1 %1158 }
 0x845   : > { %1005 = vadd.xlane.f32.xlu0 %v1004_v2 }
 0x85b   : > { %1010 = vrot.lane.b32.xlu0 %v2306_v29, %s2009_s26  ;;  %s2037_s26 = smov 40  }
 0x85f   : > { %1110 = vrot.lane.b32.xlu0 %v2306_v29, %s2035_s12 }
 0x863   : > { %1160 = vrot.lane.b32.xlu0 %v2312_v35, %s2036_s27 }
 0x8d2   : > { %v1006_v25 = vpop.xlane.xlu0 %1005 }
 0x8d3   : > { %1804 = vrcp.f32 %v1006_v25 }
 0x8d6   : > { %v1011_v30 = vpop.permute.xlu0 %1010 }
 0x8d7   : > { %v1016_v39 = vsel %vm590_vm6, %v1011_v30, 0 }
 0x8d8   : > { %1610 = vmatpush3.bf16.msra.mxu0 %v1016_v39 }
 0x8d9   : > { %1615 = vmatprep.subr.bf16.mxu0 %v2006_v0 }
 0x8da   : > { %v1111_v35 = vpop.permute.xlu0 %1110 }
 0x8db   : > { %v1116_v9 = vsel %vm471_vm3, %v1111_v35, 0 }
 0x8dd   : > { %v1805_v3 = vpop.eup %1804 }
 0x8de   : > { %v1008_v4 = vmul.f32 %v1805_v3, %v1803_v1  ;;  %v1161_v10 = vpop.permute.xlu0 %1160 }
 0x8df   : > { %v1166_v12 = vsel %vm421_vm2, %v1161_v10, 0 }
 0x8e0   : > { %v1009_v6 = vpack.c.bf16 %v1008_v4, %v1008_v4 }
 0x8e2   : > { %1612 = vmatmul.mubr.msk.bf16.vlgmr.msra.gmra.mrb[12].mxu0 %vm572_vm5, %v1009_v6 }
 0x8e3   : > { %1616 = vmatpush3.bf16.xpose.msra.mxu0 %v1066_v7  ;;  %1617 = vmatprep.mubr.msk.bf16.mxu0 %vm2007_vm0, %v2006_v0 }
 0x8e4   : > { %1621 = vmatprep.subr.bf16.mxu0 %v2006_v0 }
 0x8ea   : > { %1618 = vmatmul.mubr.msk.bf16.vlgmr.msra.gmra.mrb[16].mxu0 %vm421_vm2, %v1059_v8 }
 0x8eb   : > { %1622 = vmatpush3.bf16.xpose.msra.mxu0 %v1116_v9  ;;  %1623 = vmatprep.mubr.msk.bf16.mxu0 %vm2007_vm0, %v2006_v0 }
 0x8ec   : > { %1627 = vmatprep.subr.bf16.mxu0 %v2006_v0 }
 0x8f6   : > { %1624 = vmatmul.mubr.msk.bf16.vlgmr.msra.gmra.mrb[16].mxu0 %vm471_vm3, %v1109_v11 }
 0x8f7   : > { %1628 = vmatpush3.bf16.xpose.msra.mxu0 %v1166_v12  ;;  %1629 = vmatprep.mubr.msk.bf16.mxu0 %vm2007_vm0, %v2006_v0 }
 0x902   : > { %1630 = vmatmul.mubr.msk.bf16.vlgmr.msra.gmra.mrb[16].mxu0 %vm421_vm2, %v1159_v13 }
 0x9b5   : > { %v1052_v15 = vpop.f32.mrb[12].mxu0 }
 0x9b6   : > { %v1613_v16 = vpop.f32.mrb[13].mxu0 }
 0x9b7   : > { %v1055_v17 = vpop.f32.mrb[14].mxu0 }
 0x9b8   : > { %v1614_v18 = vpop.f32.mrb[15].mxu0 }
 0x9d5   : > { %v1202_v19 = vpop.f32.mrb[16].mxu0 }
 0x9d6   : > { %v1209_v20 = vsel %vm355_vm4, -inf, %v1202_v19  ;;  %v1631_v21 = vpop.f32.mrb[17].mxu0 }
 0x9d7   : > { %v1205_v22 = vpop.f32.mrb[18].mxu0  ;;  %v1210_v23 = vsel %vm572_vm5, %v1209_v20, -inf }
 0x9d8   : > { %1211 = vmax.xlane.f32.xlu0 %v1210_v23  ;;  %v1632_v24 = vpop.f32.mrb[19].mxu0 }
 0x9ee   : > { %1222 = vrot.lane.b32.xlu0 %v2306_v29, %s2037_s26 }
 0x9f2   : > { %1275 = vrot.lane.b32.xlu0 %v1052_v15, %s2011_s16  ;;  %s1494_s16 = sshll.u32 %s2090_s22, 7 }
 0x9f3   : > { %s2465_s7 = scalar_lea.hbm %s2515_s5, %s1494_s16 }
 0xa65   : > { %v1212_v26 = vpop.xlane.xlu0 %1211 }
 0xa66   : > { %v1213_v27 = vsub.f32 %v1209_v20, %v1212_v26 }
 0xa68   : > { %v1214_v28 = vmul.f32 1.442695, %v1213_v27 }
 0xa69   : > { %v1223_v31 = vpop.permute.xlu0 %1222 }
 0xa6a   : > { %1806 = vpow2.f32 %v1214_v28  ;;  %v1228_v32 = vsel %vm590_vm6, %v1223_v31, 0 }
 0xa6b   : > { %1634 = vmatpush3.bf16.msra.mxu1 %v1228_v32 }
 0xa6c   : > { %1639 = vmatprep.subr.bf16.mxu1 %v2006_v0 }
 0xa6d   : > { %v1276_v46 = vpop.permute.xlu0 %1275 }
 0xa74   : > { %v1807_v49 = vpop.eup %1806 }
 0xa75   : > { %v1216_v50 = vsel %vm572_vm5, %v1807_v49, 0.0 }
 0xa76   : > { %1217 = vadd.xlane.f32.xlu1 %v1216_v50 }
 0xa87   : > { %1271 = vrot.lane.b32.xlu1 %v2408_v51, %s2013_s8 }
 0xb03   : > { %v1218_v29 = vpop.xlane.xlu1 %1217 }
 0xb04   : > { %1808 = vrcp.f32 %v1218_v29 }
 0xb07   : > { %v1272_v44 = vpop.permute.xlu1 %1271 }
 0xb08   : > { %v1282_v45 = vsel %vm572_vm5, %v2372_v14, %v1272_v44 }
 0xb0e   : > { %v1809_v33 = vpop.eup %1808 }
 0xb0f   : > { %v1220_v34 = vmul.f32 %v1809_v33, %v1807_v49 }
 0xb11   : > { %v1221_v36 = vpack.c.bf16 %v1220_v34, %v1220_v34 }
 0xb13   : > { %1636 = vmatmul.mubr.msk.bf16.vlgmr.msra.gmra.mrb[12].mxu1 %vm572_vm5, %v1221_v36 }
 0xb14   : > { %1643 = vmatprep.mubr.msk.bf16.mxu1 %vm2007_vm0, %v2006_v0  ;;  %1640 = vmatpush3.bf16.msra.mxu1 %v1792_v37 }
 0xb15   : > { %1641 = vmatprep.subr.bf16.mxu1 %v2006_v0  ;;  %v1284_v0 = vsel %vm1283_vm7, %v1282_v45, %v1276_v46 }
 0xb18   : > { %1642 = vmatpush3.bf16.msra.mxu1 %v1793_v38 }
 0xbe6   : > { %v1264_v40 = vpop.f32.mrb[12].mxu1 }
 0xbe7   : > { %1279 = vrot.lane.b32.xlu1 %v1264_v40, %s2010_s11  ;;  %v1637_v41 = vpop.f32.mrb[13].mxu1  ;;  %s281_s11 = scalar_lea.vmem [#allocation10], %s1466_s23  ;;  %s2038_s23 = smov [#allocation10]  }
 0xbe8   : > { %v1267_v42 = vpop.f32.mrb[14].mxu1  ;;  %s1358_s8 = sshll.u32 %s281_s11, 4  ;;  %s1928_s15 = sshll.u32 %s2038_s23, 4  ;;  %s2467_s8 = int_to_ptr.vmem [resolvable:$true] %s1358_s8  ;;  %s1929_s15 = int_to_ptr.vmem [resolvable:$false] %s1928_s15 }
 0xbe9   : > { %v1638_v43 = vpop.f32.mrb[15].mxu1  ;;  %s1924_s22 = scalar_lea.vmem %s2467_s8, 128  ;;  %s1930_s30 = scalar_lea.vmem %s1929_s15, 256 }
 0xbea   : > { %p1925_p10 = scmp.ne.s32.totalorder %s2467_s8, %s1924_s22  ;;  %p1931_p12 = scmp.lt.s32.totalorder %s2467_s8, %s1929_s15 }
 0xbeb   : > { %p1932_p2 = scmp.lt.s32.totalorder %s1930_s30, %s1924_s22 }
 0xbec   : > { %p1926_p3 = pnand %p1925_p10, %p2214_p5 }
 0xbed   : > { %p1933_p1 = por %p1932_p2, %p1931_p12 }
 0xbee   : > { %p1927_p7 = pneg %p1926_p3 }
 0xbf0   : > { %p1934_p4 = pnand %p1933_p1, %p1927_p7 }
 0xc59   : > { %v1280_v47 = vpop.permute.xlu1 %1279 }
 0xc5a   : > { %v1286_v48 = vsel %vm1285_vm8, %v1284_v0, %v1280_v47 }
 0xc5b   : > { %v1287_v51 = vpack.c.bf16 %v1286_v48, %v1286_v48 }
 0xc5d   : > { %1644 = vmatmul.mubr.msk.bf16.vlgmr.msra.gmra.mrb[16].mxu1 %vm307_vm1, %v1287_v51 }
 0xd30   : > { %v1337_v14 = vpop.f32.mrb[16].mxu1 }
 0xd31   : > { %1343 = vst.msk [vmem:[%s281_s11] sm:$0xff] %vm307_vm1, %v1337_v14  ;;  %v1645_v52 = vpop.f32.mrb[17].mxu1 }
 0xd32   : > { %v1340_v53 = vpop.f32.mrb[18].mxu1 }
 0xd33   : > { %1937 = shalt.err (!%p1934_p4)
}
 0xd34   : > { %s1938_s6 = scalar_lea.hbm %s2465_s7, 128  ;;  %s1942_s12 = scalar_lea.hbm %s2515_s5, 256 }
 0xd35   : > { %p1939_p0 = scmp.ne.s32.totalorder %s2465_s7, %s1938_s6  ;;  %p1943_p8 = scmp.lt.u32.totalorder %s2465_s7, %s2515_s5 }
 0xd36   : > { %p1944_p13 = scmp.lt.u32.totalorder %s1942_s12, %s1938_s6  ;;  %p1946_p10 = scmp.lt.u32.totalorder %s1938_s6, %s2465_s7 }
 0xd37   : > { %p1940_p9 = pnand %p1939_p0, %p2214_p5 }
 0xd38   : > { %p1945_p6 = por %p1944_p13, %p1943_p8 }
 0xd39   : > { %p1941_p11 = pneg %p1940_p9 }
 0xd3a   : > { %p1947_p3 = por %p1946_p10, %p1945_p6 }
 0xd3c   : > { %p1948_p7 = pnand %p1947_p3, %p1941_p11 }
 0xd3e   : > { %1951 = shalt.err (!%p1948_p7)
}
 0xd3f   : > { %1693 = dma.vmem_to_hbm [thread:$0]  (%p2214_p5), %s2467_s8, 128, %s2465_s7, %s1345_s13   ;;  %v1646_v54 = vpop.f32.mrb[19].mxu1 }
 0xd40 PF: > { %s1370_s16 = sand.u32 1, %s1986_s18   ;;  %p2533_p12 = scmp.ne.s32.totalorder %s2520_s25, 0 }
 0xd41   : > { %p2534_p2 = scmp.ge.s32.totalorder %s1998_s21, 2  ;;  %s1371_s11 = scalar_lea.sflag [#allocation4], %s1370_s16 }
 0xd43   : > { %p1710_p1 = pnand %p2534_p2, %p2533_p12 }
 0xd45   : > { %1981 = dma.done.wait (!%p1710_p1), %s1371_s11, 128  }
 0xd46   : > { %1983 = vsyncadd (!%p1710_p1), %s1371_s11, 4294967168  ;;  %p20_p4 = scmp.ge.s32.totalorder %s2200_s14, 4   ;;  %s2535_s18 = smov %s1990_s19 }
 0xd47   : > { %s2536_s19 = smov %s1994_s20  ;;  %s2537_s20 = smov %s2210_s28 }
 0xd48   : > { %s2538_s21 = smov %s2200_s14  ;;  %22 = sbr.rel (!%p20_p4) target bundleno = 7 (0x7), region = 97 }
 0xd4f   :  { %1376 = vsyncpa [#allocation3], 1 }
 0xd50   :  { %1378 = vsyncpa [#allocation3 + $0x1], 1 }
 0xd51   :  { %1379 = vsyncpa [#allocation6], 1 }
 0xd52   :  { %1380 = vsyncpa [#allocation9], 1 }
 0xd53   :  { %1381 = vsyncpa [#allocation4], 1 }
 0xd54   :  { %1383 = vsyncpa [#allocation4 + $0x1], 1 }

</bundles_post_ra>
